<compile_context>
chip_gen: v7x
topology: tpu7x:2x2x1
jax: 0.10.0
libtpu: 0.0.40
codegen_flags: <defaults>
</compile_context>

<pallas_src>
import functools
import math

import jax
import jax.numpy as jnp
import numpy as np
from jax import lax
from jax.experimental import pallas as pl
from jax.experimental.pallas import tpu as pltpu

MATMUL_DTYPE = jnp.bfloat16     # MXU operand dtype (accumulation stays f32)
KV_CACHE_DTYPE = jnp.bfloat16   # KV cache storage dtype

# <= v7x's 64 MiB/TC physical VMEM; more headroom than 32 MiB on v5e/v6e.
_VMEM_LIMIT_BYTES = 48 * 1024 * 1024


def _round_up(x, m):
    return (x + m - 1) // m * m


def _pick_tile(dim, preferred, aligns):
    """Largest block <= `preferred` that divides `dim` and is a multiple of one
    of `aligns` (tried in order).  Falls back to the full dim (always legal)."""
    if dim <= preferred:
        return dim
    if isinstance(aligns, int):
        aligns = (aligns,)
    for a in aligns:
        cand = (preferred // a) * a
        while cand >= a:
            if dim % cand == 0:
                return cand
            cand -= a
    return dim


# ----------------------------------------------------------------------------
# Tiled linear:  y = x @ w + b   (bf16 operands, f32 accumulation on the MXU)
# ----------------------------------------------------------------------------
def _linear_kernel(x_ref, w_ref, b_ref, o_ref, acc_ref):
    @pl.when(pl.program_id(2) == 0)
    def _init():
        acc_ref[...] = jnp.zeros_like(acc_ref)

    acc_ref[...] += jnp.dot(x_ref[...], w_ref[...],
                            preferred_element_type=jnp.float32)

    @pl.when(pl.program_id(2) == pl.num_programs(2) - 1)
    def _finish():
        o_ref[...] = (acc_ref[...] + b_ref[...]).astype(o_ref.dtype)


def linear(x, w, b, *, compute_dtype=MATMUL_DTYPE):
    """x: (M, K), w: (K, N), b: (N,) -> (M, N) float32.

    Weights/biases are expected pre-cast (prepare_params); only the activation
    is cast here.  M is padded to a tile multiple and sliced back."""
    M, K = x.shape
    Kw, N = w.shape
    assert K == Kw
    m_align = 16 if compute_dtype == jnp.bfloat16 else 8   # sublane packing
    tm = min(256, _round_up(M, m_align))
    tn = _pick_tile(N, 512, (256, 128))
    tk = _pick_tile(K, 1024, (256, 128))
    Mp = _round_up(M, tm)

    x = x.astype(compute_dtype)
    if Mp != M:
        x = jnp.pad(x, ((0, Mp - M), (0, 0)))
    w = w.astype(compute_dtype)                 # no-op when already bf16
    b2d = b.reshape(1, N).astype(jnp.float32)

    grid = (Mp // tm, N // tn, K // tk)
    out = pl.pallas_call(
        _linear_kernel,
        out_shape=jax.ShapeDtypeStruct((Mp, N), jnp.float32),
        grid=grid,
        in_specs=[
            pl.BlockSpec((tm, tk), lambda i, j, k: (i, k)),
            pl.BlockSpec((tk, tn), lambda i, j, k: (k, j)),
            pl.BlockSpec((1, tn), lambda i, j, k: (0, j)),
        ],
        out_specs=pl.BlockSpec((tm, tn), lambda i, j, k: (i, j)),
        scratch_shapes=[pltpu.VMEM((tm, tn), jnp.float32)],
        compiler_params=pltpu.CompilerParams(
            dimension_semantics=("parallel", "parallel", "arbitrary"),
            vmem_limit_bytes=_VMEM_LIMIT_BYTES,
        ),
    )(x, w, b2d)
    return out[:M] if Mp != M else out


# ----------------------------------------------------------------------------
# Flash attention over the KV cache
#   * grid (B, KVH, M_blocks, T_blocks); M = n_rep * S (grouped query heads)
#   * online softmax over the T ("arbitrary") axis, m/l/acc scratch in f32
# ----------------------------------------------------------------------------
def _make_flash_kernel(t_valid, t_blk, num_t, needs_mask):
    last = num_t - 1
    tail = t_valid - last * t_blk          # valid columns in the last block

    def kernel(q_ref, k_ref, v_ref, o_ref, m_ref, l_ref, acc_ref):
        ti = pl.program_id(3)

        @pl.when(ti == 0)
        def _init():
            m_ref[...] = jnp.full_like(m_ref, -jnp.inf)
            l_ref[...] = jnp.zeros_like(l_ref)
            acc_ref[...] = jnp.zeros_like(acc_ref)

        q = q_ref[0, 0]                    # (m_blk, D) bf16, 1/sqrt(D) pre-folded
        k = k_ref[0, 0]                    # (t_blk, D) bf16
        v = v_ref[0, 0]                    # (t_blk, D) bf16

        # QK^T with D contracted on both operands (MXU streams the transpose;
        # no materialized K^T / XLU work per KV block).
        s = lax.dot_general(q, k, (((1,), (1,)), ((), ())),
                            preferred_element_type=jnp.float32)

        if needs_mask:
            def _mask(scores):
                col = lax.broadcasted_iota(jnp.int32, scores.shape, 1)
                return jnp.where(col < tail, scores, -jnp.inf)
            if num_t == 1:
                s = _mask(s)               # only block == last block
            else:
                # Only the last KV block can straddle t_valid.
                s = lax.cond(ti == last, _mask, lambda scores: scores, s)

        m_prev = m_ref[...]
        m_new = jnp.maximum(m_prev, jnp.max(s, axis=-1, keepdims=True))
        alpha = jnp.exp(m_prev - m_new)
        p = jnp.exp(s - m_new)
        l_ref[...] = alpha * l_ref[...] + jnp.sum(p, axis=-1, keepdims=True)
        acc_ref[...] = alpha * acc_ref[...] + jnp.dot(
            p.astype(v.dtype), v, preferred_element_type=jnp.float32)
        m_ref[...] = m_new

        @pl.when(ti == last)
        def _finish():
            l = l_ref[...]
            inv = pl.reciprocal(l, approx=True)     # EUP
            inv = inv * (2.0 - l * inv)             # one Newton step
            o_ref[0, 0] = (acc_ref[...] * inv).astype(o_ref.dtype)

    return kernel


def flash_attention(q, cache_k, cache_v, t_valid):
    """q: (B, KVH, M, D) with the n_rep query heads of each KV group folded into
    the M axis; cache_k/v: (MAX_B, KVH, T_MAX, D) bf16.  Attends to [0, t_valid)."""
    B, KVH, M, D = q.shape
    MAX_B, KVH2, T_MAX, D2 = cache_k.shape
    assert KVH == KVH2 and D == D2 and B <= MAX_B
    assert 1 <= t_valid <= T_MAX

    m_blk = _pick_tile(M, 512, (16, 8))
    t_blk = _pick_tile(T_MAX, 1024, 128)     # divides T_MAX -> never OOB
    num_t = int(pl.cdiv(t_valid, t_blk))
    needs_mask = (num_t * t_blk != t_valid)
    kernel = _make_flash_kernel(t_valid, t_blk, num_t, needs_mask)

    grid = (B, KVH, M // m_blk, num_t)
    return pl.pallas_call(
        kernel,
        out_shape=jax.ShapeDtypeStruct((B, KVH, M, D), jnp.bfloat16),
        grid=grid,
        in_specs=[
            pl.BlockSpec((1, 1, m_blk, D), lambda b, g, mi, ti: (b, g, mi, 0)),
            # KV indexed directly by kv-group g: fetched once per group/KV-block.
            pl.BlockSpec((1, 1, t_blk, D), lambda b, g, mi, ti: (b, g, ti, 0)),
            pl.BlockSpec((1, 1, t_blk, D), lambda b, g, mi, ti: (b, g, ti, 0)),
        ],
        out_specs=pl.BlockSpec((1, 1, m_blk, D), lambda b, g, mi, ti: (b, g, mi, 0)),
        scratch_shapes=[
            pltpu.VMEM((m_blk, 1), jnp.float32),   # running max
            pltpu.VMEM((m_blk, 1), jnp.float32),   # running denom
            pltpu.VMEM((m_blk, D), jnp.float32),   # output accumulator
        ],
        compiler_params=pltpu.CompilerParams(
            dimension_semantics=("parallel", "parallel", "parallel", "arbitrary"),
            vmem_limit_bytes=_VMEM_LIMIT_BYTES,
        ),
    )(q, cache_k, cache_v)


# ----------------------------------------------------------------------------
# RoPE glue (plain JAX, elementwise) — interleaved pairs, matches
# torch.view_as_complex on reshape(..., -1, 2) in the spec module.
# ----------------------------------------------------------------------------
def apply_rotary(x, cos, sin):
    """x: (B, S, Hn, D); cos/sin: (S, D//2)."""
    B, S, Hn, D = x.shape
    x2 = x.reshape(B, S, Hn, D // 2, 2)
    xr, xi = x2[..., 0], x2[..., 1]
    c = cos[None, :, None, :]
    s = sin[None, :, None, :]
    yr = xr * c - xi * s
    yi = xr * s + xi * c
    return jnp.stack([yr, yi], axis=-1).reshape(B, S, Hn, D)


# ----------------------------------------------------------------------------
# Parameter preparation (done ONCE, outside the forward)
# ----------------------------------------------------------------------------
def prepare_params(params, head_dim, compute_dtype=MATMUL_DTYPE):
    """Fold 1/sqrt(D) into wq/bq (RoPE is a rotation, so the scale commutes)
    and cast weights to the MXU operand dtype once."""
    scale = 1.0 / math.sqrt(head_dim)
    p = {}
    p["wq"] = (params["wq"] * scale).astype(compute_dtype)
    p["bq"] = (params["bq"] * scale).astype(jnp.float32)
    for name in ("wk", "wv", "wo"):
        p[name] = params[name].astype(compute_dtype)
    for name in ("bk", "bv", "bo"):
        p[name] = params[name].astype(jnp.float32)
    return p


# ----------------------------------------------------------------------------
# SelfAttention forward (Pallas-backed)
# ----------------------------------------------------------------------------
def self_attention_forward(params, x, cache_k, cache_v, cos, sin, *, start_pos, cfg):
    """cache_k/cache_v: (max_batch, n_kv_heads, max_pos, head_dim) bf16, head-major.

    Returns (out, new_cache_k, new_cache_v)."""
    B, S, hidden = x.shape
    H, KVH, D = cfg["n_heads"], cfg["n_kv_heads"], cfg["head_dim"]
    n_rep = H // KVH

    x2d = x.reshape(B * S, hidden)
    xq = linear(x2d, params["wq"], params["bq"]).reshape(B, S, H, D)
    xk = linear(x2d, params["wk"], params["bk"]).reshape(B, S, KVH, D)
    xv = linear(x2d, params["wv"], params["bv"]).reshape(B, S, KVH, D)

    xq = apply_rotary(xq, cos, sin)
    xk = apply_rotary(xk, cos, sin)

    # Write ONLY the new tokens (bf16) into the threaded-through KV cache; with
    # donated caches this is an in-place slice update.
    cache_k = lax.dynamic_update_slice(
        cache_k, jnp.transpose(xk, (0, 2, 1, 3)).astype(cache_k.dtype),
        (0, 0, start_pos, 0))
    cache_v = lax.dynamic_update_slice(
        cache_v, jnp.transpose(xv, (0, 2, 1, 3)).astype(cache_v.dtype),
        (0, 0, start_pos, 0))

    t_valid = start_pos + S

    # Fold the n_rep query heads of each KV group into one M = n_rep*S axis:
    # (B,S,H,D) -> (B,H,S,D) -> (B,KVH,n_rep*S,D).  Head h maps to group h//n_rep,
    # matching repeat_kv.  Queries attend to the full [0, t_valid) range (no
    # causal mask), so any tiling of the folded axis is valid.
    q_g = jnp.transpose(xq, (0, 2, 1, 3)).reshape(B, KVH, n_rep * S, D)
    q_g = q_g.astype(MATMUL_DTYPE)

    attn = flash_attention(q_g, cache_k, cache_v, t_valid)     # (B,KVH,n_rep*S,D)
    attn = attn.reshape(B, H, S, D)
    out2d = jnp.transpose(attn, (0, 2, 1, 3)).reshape(B * S, H * D)
    out = linear(out2d, params["wo"], params["bo"])             # o_proj (bias = 0)
    return out.reshape(B, S, hidden), cache_k, cache_v


# Pure-JAX f32 reference (fresh zero cache like the PyTorch module after
# __init__; no causal mask, interleaved RoPE — matches the module exactly).
def self_attention_reference(params, x, start_pos, cos, sin, cfg):
    B, S, hidden = x.shape
    H, KVH, D = cfg["n_heads"], cfg["n_kv_heads"], cfg["head_dim"]
    n_rep = H // KVH
    x2d = x.reshape(B * S, hidden)
    xq = (x2d @ params["wq"] + params["bq"]).reshape(B, S, H, D)
    xk = (x2d @ params["wk"] + params["bk"]).reshape(B, S, KVH, D)
    xv = (x2d @ params["wv"] + params["bv"]).reshape(B, S, KVH, D)
    xq = apply_rotary(xq, cos, sin)
    xk = apply_rotary(xk, cos, sin)
    zeros = jnp.zeros((B, start_pos, KVH, D), jnp.float32)
    keys = jnp.repeat(jnp.concatenate([zeros, xk], axis=1), n_rep, axis=2)
    values = jnp.repeat(jnp.concatenate([zeros, xv], axis=1), n_rep, axis=2)
    q = jnp.transpose(xq, (0, 2, 1, 3))
    k = jnp.transpose(keys, (0, 2, 1, 3))
    v = jnp.transpose(values, (0, 2, 1, 3))
    s = jnp.einsum("bhqd,bhkd->bhqk", q, k) / math.sqrt(D)
    p = jax.nn.softmax(s, axis=-1)
    o = jnp.einsum("bhqk,bhkd->bhqd", p, v)
    o = jnp.transpose(o, (0, 2, 1, 3)).reshape(B * S, H * D)
    return (o @ params["wo"]).reshape(B, S, hidden)


# ----------------------------------------------------------------------------
# Main
# ----------------------------------------------------------------------------
if __name__ == "__main__":
    cfg = dict(
        hidden=32,
        n_heads=4,
        n_kv_heads=2,
        head_dim=8,          # hidden // n_heads, like the module
        max_batch=4,
        max_pos=32,
        rope_theta=1000000.0,
    )
    B, S, start_pos = 2, 8, 4
    hidden, H, KVH, D = cfg["hidden"], cfg["n_heads"], cfg["n_kv_heads"], cfg["head_dim"]

    key = jax.random.PRNGKey(0)
    ks = jax.random.split(key, 8)
    raw_params = {
        # weights stored as (in, out) = W^T of nn.Linear's (out, in)
        "wq": 0.05 * jax.random.normal(ks[0], (hidden, H * D), jnp.float32),
        "bq": 0.01 * jax.random.normal(ks[1], (H * D,), jnp.float32),
        "wk": 0.05 * jax.random.normal(ks[2], (hidden, KVH * D), jnp.float32),
        "bk": 0.01 * jax.random.normal(ks[3], (KVH * D,), jnp.float32),
        "wv": 0.05 * jax.random.normal(ks[4], (hidden, KVH * D), jnp.float32),
        "bv": 0.01 * jax.random.normal(ks[5], (KVH * D,), jnp.float32),
        "wo": 0.05 * jax.random.normal(ks[6], (H * D, hidden), jnp.float32),
        "bo": jnp.zeros((hidden,), jnp.float32),  # o_proj has bias=False
    }
    x = jax.random.normal(ks[7], (B, S, hidden), jnp.float32)

    # One-time parameter prep: bf16 weights, scale folded into wq/bq.
    params = prepare_params(raw_params, D)

    # Rotary frequencies for positions [start_pos, start_pos + S).
    inv_freq = 1.0 / (cfg["rope_theta"] ** (jnp.arange(0, D, 2, jnp.float32) / D))
    pos = jnp.arange(start_pos, start_pos + S, dtype=jnp.float32)
    angles = jnp.outer(pos, inv_freq)             # (S, D//2)
    cos, sin = jnp.cos(angles), jnp.sin(angles)

    # Head-major bf16 KV cache (same buffer as the module, different layout/dtype).
    cache_k = jnp.zeros((cfg["max_batch"], KVH, cfg["max_pos"], D), KV_CACHE_DTYPE)
    cache_v = jnp.zeros((cfg["max_batch"], KVH, cfg["max_pos"], D), KV_CACHE_DTYPE)

    @functools.partial(jax.jit, donate_argnums=(2, 3))
    def fwd(params, x, cache_k, cache_v, cos, sin):
        return self_attention_forward(params, x, cache_k, cache_v, cos, sin,
                                      start_pos=start_pos, cfg=cfg)

    out, cache_k, cache_v = fwd(params, x, cache_k, cache_v, cos, sin)
    out = jax.block_until_ready(out)

    ref = self_attention_reference(raw_params, x, start_pos, cos, sin, cfg)
    # Tolerance covers bf16 operands / bf16 KV cache vs the f32 reference.
    np.testing.assert_allclose(np.asarray(out), np.asarray(ref), rtol=2e-2, atol=2e-2)

    print("KERNEL_OK")
</pallas_src>

<mosaic_0001>
module attributes {stable_mosaic.version = 11 : i64} {
  func.func @_linear_kernel(%arg0: i32, %arg1: i32, %arg2: i32, %arg3: memref<16x32xbf16, #tpu.memory_space<vmem>>, %arg4: memref<32x16xbf16, #tpu.memory_space<vmem>>, %arg5: memref<1x16xf32, #tpu.memory_space<vmem>>, %arg6: memref<16x16xf32, #tpu.memory_space<vmem>>, %arg7: memref<16x16xf32, #tpu.memory_space<vmem>>) attributes {dimension_semantics = [#tpu.dimension_semantics<parallel>, #tpu.dimension_semantics<parallel>, #tpu.dimension_semantics<arbitrary>], iteration_bounds = array<i64: 1, 1, 1>, scalar_prefetch = 0 : i64, scratch_operands = 1 : i64, tpu.core_type = #tpu.core_type<tc>, window_params = [{transform_indices = @transform_0, window_bounds = array<i64: 16, 32>}, {transform_indices = @transform_1, window_bounds = array<i64: 32, 16>}, {transform_indices = @transform_2, window_bounds = array<i64: 1, 16>}, {transform_indices = @transform_3, window_bounds = array<i64: 16, 16>}]} {
    %c0_i32 = arith.constant 0 : i32
    %0 = arith.cmpi eq, %arg2, %c0_i32 : i32
    %1 = arith.extui %0 : i1 to i32
    %c0_i32_0 = arith.constant 0 : i32
    %2 = arith.cmpi ne, %1, %c0_i32_0 : i32
    scf.if %2 {
      %cst_10 = arith.constant 0.000000e+00 : f32
      %12 = vector.broadcast %cst_10 : f32 to vector<16x16xf32>
      %c0_11 = arith.constant 0 : index
      %c0_12 = arith.constant 0 : index
      %13 = vector.load %arg7[%c0_11, %c0_12] : memref<16x16xf32, #tpu.memory_space<vmem>>, vector<16x16xf32>
      tpu.vector_store %arg7[%c0_11, %c0_12], %12 {strides = array<i32>} : memref<16x16xf32, #tpu.memory_space<vmem>>, vector<16x16xf32>,
    } else {
    }
    %c0 = arith.constant 0 : index
    %c0_1 = arith.constant 0 : index
    %3 = vector.load %arg7[%c0, %c0_1] : memref<16x16xf32, #tpu.memory_space<vmem>>, vector<16x16xf32>
    %c0_2 = arith.constant 0 : index
    %c0_3 = arith.constant 0 : index
    %4 = vector.load %arg3[%c0_2, %c0_3] : memref<16x32xbf16, #tpu.memory_space<vmem>>, vector<16x32xbf16>
    %c0_4 = arith.constant 0 : index
    %c0_5 = arith.constant 0 : index
    %5 = vector.load %arg4[%c0_4, %c0_5] : memref<32x16xbf16, #tpu.memory_space<vmem>>, vector<32x16xbf16>
    %cst = arith.constant dense<0.000000e+00> : vector<16x16xf32>
    %6 = tpu.matmul %4, %5, %cst {dimension_numbers = #tpu.dot_dimension_numbers<[1], [0], [0], [1], [0, 0, 1, 1], [], []>} : vector<16x32xbf16>, vector<32x16xbf16>, vector<16x16xf32> -> vector<16x16xf32>
    %7 = arith.addf %3, %6 : vector<16x16xf32>
    %c0_6 = arith.constant 0 : index
    %c0_7 = arith.constant 0 : index
    %8 = vector.load %arg7[%c0_6, %c0_7] : memref<16x16xf32, #tpu.memory_space<vmem>>, vector<16x16xf32>
    tpu.vector_store %arg7[%c0_6, %c0_7], %7 {strides = array<i32>} : memref<16x16xf32, #tpu.memory_space<vmem>>, vector<16x16xf32>,
    %c0_i32_8 = arith.constant 0 : i32
    %9 = arith.cmpi eq, %arg2, %c0_i32_8 : i32
    %10 = arith.extui %9 : i1 to i32
    %c0_i32_9 = arith.constant 0 : i32
    %11 = arith.cmpi ne, %10, %c0_i32_9 : i32
    scf.if %11 {
      %c0_10 = arith.constant 0 : index
      %c0_11 = arith.constant 0 : index
      %12 = vector.load %arg7[%c0_10, %c0_11] : memref<16x16xf32, #tpu.memory_space<vmem>>, vector<16x16xf32>
      %c0_12 = arith.constant 0 : index
      %c0_13 = arith.constant 0 : index
      %13 = vector.load %arg5[%c0_12, %c0_13] : memref<1x16xf32, #tpu.memory_space<vmem>>, vector<1x16xf32>
      %14 = vector.broadcast %13 : vector<1x16xf32> to vector<16x16xf32>
      %15 = arith.addf %12, %14 : vector<16x16xf32>
      %c0_14 = arith.constant 0 : index
      %c0_15 = arith.constant 0 : index
      %16 = vector.load %arg6[%c0_14, %c0_15] : memref<16x16xf32, #tpu.memory_space<vmem>>, vector<16x16xf32>
      tpu.vector_store %arg6[%c0_14, %c0_15], %15 {strides = array<i32>} : memref<16x16xf32, #tpu.memory_space<vmem>>, vector<16x16xf32>,
    } else {
    }
    return
  }
  func.func @transform_0(%arg0: i32, %arg1: i32, %arg2: i32) -> (i32, i32) {
    %c0_i32 = arith.constant 0 : i32
    return %arg0, %arg2 : i32, i32
  }
  func.func @transform_1(%arg0: i32, %arg1: i32, %arg2: i32) -> (i32, i32) {
    %c0_i32 = arith.constant 0 : i32
    return %arg2, %arg1 : i32, i32
  }
  func.func @transform_2(%arg0: i32, %arg1: i32, %arg2: i32) -> (i32, i32) {
    %c0_i32 = arith.constant 0 : i32
    %c0_i32_0 = arith.constant 0 : i32
    return %c0_i32, %arg1 : i32, i32
  }
  func.func @transform_3(%arg0: i32, %arg1: i32, %arg2: i32) -> (i32, i32) {
    %c0_i32 = arith.constant 0 : i32
    return %arg0, %arg1 : i32, i32
  }
}

module attributes {stable_mosaic.version = 11 : i64} {
  func.func @_linear_kernel(%arg0: i32, %arg1: i32, %arg2: i32, %arg3: memref<16x32xbf16, #tpu.memory_space<vmem>>, %arg4: memref<32x32xbf16, #tpu.memory_space<vmem>>, %arg5: memref<1x32xf32, #tpu.memory_space<vmem>>, %arg6: memref<16x32xf32, #tpu.memory_space<vmem>>, %arg7: memref<16x32xf32, #tpu.memory_space<vmem>>) attributes {dimension_semantics = [#tpu.dimension_semantics<parallel>, #tpu.dimension_semantics<parallel>, #tpu.dimension_semantics<arbitrary>], iteration_bounds = array<i64: 1, 1, 1>, scalar_prefetch = 0 : i64, scratch_operands = 1 : i64, tpu.core_type = #tpu.core_type<tc>, window_params = [{transform_indices = @transform_0, window_bounds = array<i64: 16, 32>}, {transform_indices = @transform_1, window_bounds = array<i64: 32, 32>}, {transform_indices = @transform_2, window_bounds = array<i64: 1, 32>}, {transform_indices = @transform_3, window_bounds = array<i64: 16, 32>}]} {
    %c0_i32 = arith.constant 0 : i32
    %0 = arith.cmpi eq, %arg2, %c0_i32 : i32
    %1 = arith.extui %0 : i1 to i32
    %c0_i32_0 = arith.constant 0 : i32
    %2 = arith.cmpi ne, %1, %c0_i32_0 : i32
    scf.if %2 {
      %cst_10 = arith.constant 0.000000e+00 : f32
      %12 = vector.broadcast %cst_10 : f32 to vector<16x32xf32>
      %c0_11 = arith.constant 0 : index
      %c0_12 = arith.constant 0 : index
      %13 = vector.load %arg7[%c0_11, %c0_12] : memref<16x32xf32, #tpu.memory_space<vmem>>, vector<16x32xf32>
      tpu.vector_store %arg7[%c0_11, %c0_12], %12 {strides = array<i32>} : memref<16x32xf32, #tpu.memory_space<vmem>>, vector<16x32xf32>,
    } else {
    }
    %c0 = arith.constant 0 : index
    %c0_1 = arith.constant 0 : index
    %3 = vector.load %arg7[%c0, %c0_1] : memref<16x32xf32, #tpu.memory_space<vmem>>, vector<16x32xf32>
    %c0_2 = arith.constant 0 : index
    %c0_3 = arith.constant 0 : index
    %4 = vector.load %arg3[%c0_2, %c0_3] : memref<16x32xbf16, #tpu.memory_space<vmem>>, vector<16x32xbf16>
    %c0_4 = arith.constant 0 : index
    %c0_5 = arith.constant 0 : index
    %5 = vector.load %arg4[%c0_4, %c0_5] : memref<32x32xbf16, #tpu.memory_space<vmem>>, vector<32x32xbf16>
    %cst = arith.constant dense<0.000000e+00> : vector<16x32xf32>
    %6 = tpu.matmul %4, %5, %cst {dimension_numbers = #tpu.dot_dimension_numbers<[1], [0], [0], [1], [0, 0, 1, 1], [], []>} : vector<16x32xbf16>, vector<32x32xbf16>, vector<16x32xf32> -> vector<16x32xf32>
    %7 = arith.addf %3, %6 : vector<16x32xf32>
    %c0_6 = arith.constant 0 : index
    %c0_7 = arith.constant 0 : index
    %8 = vector.load %arg7[%c0_6, %c0_7] : memref<16x32xf32, #tpu.memory_space<vmem>>, vector<16x32xf32>
    tpu.vector_store %arg7[%c0_6, %c0_7], %7 {strides = array<i32>} : memref<16x32xf32, #tpu.memory_space<vmem>>, vector<16x32xf32>,
    %c0_i32_8 = arith.constant 0 : i32
    %9 = arith.cmpi eq, %arg2, %c0_i32_8 : i32
    %10 = arith.extui %9 : i1 to i32
    %c0_i32_9 = arith.constant 0 : i32
    %11 = arith.cmpi ne, %10, %c0_i32_9 : i32
    scf.if %11 {
      %c0_10 = arith.constant 0 : index
      %c0_11 = arith.constant 0 : index
      %12 = vector.load %arg7[%c0_10, %c0_11] : memref<16x32xf32, #tpu.memory_space<vmem>>, vector<16x32xf32>
      %c0_12 = arith.constant 0 : index
      %c0_13 = arith.constant 0 : index
      %13 = vector.load %arg5[%c0_12, %c0_13] : memref<1x32xf32, #tpu.memory_space<vmem>>, vector<1x32xf32>
      %14 = vector.broadcast %13 : vector<1x32xf32> to vector<16x32xf32>
      %15 = arith.addf %12, %14 : vector<16x32xf32>
      %c0_14 = arith.constant 0 : index
      %c0_15 = arith.constant 0 : index
      %16 = vector.load %arg6[%c0_14, %c0_15] : memref<16x32xf32, #tpu.memory_space<vmem>>, vector<16x32xf32>
      tpu.vector_store %arg6[%c0_14, %c0_15], %15 {strides = array<i32>} : memref<16x32xf32, #tpu.memory_space<vmem>>, vector<16x32xf32>,
    } else {
    }
    return
  }
  func.func @transform_0(%arg0: i32, %arg1: i32, %arg2: i32) -> (i32, i32) {
    %c0_i32 = arith.constant 0 : i32
    return %arg0, %arg2 : i32, i32
  }
  func.func @transform_1(%arg0: i32, %arg1: i32, %arg2: i32) -> (i32, i32) {
    %c0_i32 = arith.constant 0 : i32
    return %arg2, %arg1 : i32, i32
  }
  func.func @transform_2(%arg0: i32, %arg1: i32, %arg2: i32) -> (i32, i32) {
    %c0_i32 = arith.constant 0 : i32
    %c0_i32_0 = arith.constant 0 : i32
    return %c0_i32, %arg1 : i32, i32
  }
  func.func @transform_3(%arg0: i32, %arg1: i32, %arg2: i32) -> (i32, i32) {
    %c0_i32 = arith.constant 0 : i32
    return %arg0, %arg1 : i32, i32
  }
}

module attributes {stable_mosaic.version = 11 : i64} {
  func.func @kernel(%arg0: i32, %arg1: i32, %arg2: i32, %arg3: i32, %arg4: memref<1x1x16x8xbf16, #tpu.memory_space<vmem>>, %arg5: memref<1x1x32x8xbf16, #tpu.memory_space<vmem>>, %arg6: memref<1x1x32x8xbf16, #tpu.memory_space<vmem>>, %arg7: memref<1x1x16x8xbf16, #tpu.memory_space<vmem>>, %arg8: memref<16x1xf32, #tpu.memory_space<vmem>>, %arg9: memref<16x1xf32, #tpu.memory_space<vmem>>, %arg10: memref<16x8xf32, #tpu.memory_space<vmem>>) attributes {dimension_semantics = [#tpu.dimension_semantics<parallel>, #tpu.dimension_semantics<parallel>, #tpu.dimension_semantics<parallel>, #tpu.dimension_semantics<arbitrary>], iteration_bounds = array<i64: 2, 2, 1, 1>, scalar_prefetch = 0 : i64, scratch_operands = 3 : i64, tpu.core_type = #tpu.core_type<tc>, window_params = [{transform_indices = @transform_0, window_bounds = array<i64: 1, 1, 16, 8>}, {transform_indices = @transform_1, window_bounds = array<i64: 1, 1, 32, 8>}, {transform_indices = @transform_2, window_bounds = array<i64: 1, 1, 32, 8>}, {transform_indices = @transform_3, window_bounds = array<i64: 1, 1, 16, 8>}]} {
    %c0_i32 = arith.constant 0 : i32
    %0 = arith.cmpi eq, %arg3, %c0_i32 : i32
    %1 = arith.extui %0 : i1 to i32
    %c0_i32_0 = arith.constant 0 : i32
    %2 = arith.cmpi ne, %1, %c0_i32_0 : i32
    scf.if %2 {
      %cst_30 = arith.constant 0xFF800000 : f32
      %41 = vector.broadcast %cst_30 : f32 to vector<16x1xf32>
      %c0_31 = arith.constant 0 : index
      %c0_32 = arith.constant 0 : index
      %42 = vector.load %arg8[%c0_31, %c0_32] : memref<16x1xf32, #tpu.memory_space<vmem>>, vector<16x1xf32>
      tpu.vector_store %arg8[%c0_31, %c0_32], %41 {strides = array<i32>} : memref<16x1xf32, #tpu.memory_space<vmem>>, vector<16x1xf32>,
      %cst_33 = arith.constant 0.000000e+00 : f32
      %43 = vector.broadcast %cst_33 : f32 to vector<16x1xf32>
      %c0_34 = arith.constant 0 : index
      %c0_35 = arith.constant 0 : index
      %44 = vector.load %arg9[%c0_34, %c0_35] : memref<16x1xf32, #tpu.memory_space<vmem>>, vector<16x1xf32>
      tpu.vector_store %arg9[%c0_34, %c0_35], %43 {strides = array<i32>} : memref<16x1xf32, #tpu.memory_space<vmem>>, vector<16x1xf32>,
      %cst_36 = arith.constant 0.000000e+00 : f32
      %45 = vector.broadcast %cst_36 : f32 to vector<16x8xf32>
      %c0_37 = arith.constant 0 : index
      %c0_38 = arith.constant 0 : index
      %46 = vector.load %arg10[%c0_37, %c0_38] : memref<16x8xf32, #tpu.memory_space<vmem>>, vector<16x8xf32>
      tpu.vector_store %arg10[%c0_37, %c0_38], %45 {strides = array<i32>} : memref<16x8xf32, #tpu.memory_space<vmem>>, vector<16x8xf32>,
    } else {
    }
    %c0 = arith.constant 0 : index
    %c0_1 = arith.constant 0 : index
    %c0_2 = arith.constant 0 : index
    %c0_3 = arith.constant 0 : index
    %3 = vector.load %arg4[%c0, %c0_1, %c0_2, %c0_3] : memref<1x1x16x8xbf16, #tpu.memory_space<vmem>>, vector<1x1x16x8xbf16>
    %4 = vector.shape_cast %3 : vector<1x1x16x8xbf16> to vector<16x8xbf16>
    %c0_4 = arith.constant 0 : index
    %c0_5 = arith.constant 0 : index
    %c0_6 = arith.constant 0 : index
    %c0_7 = arith.constant 0 : index
    %5 = vector.load %arg5[%c0_4, %c0_5, %c0_6, %c0_7] : memref<1x1x32x8xbf16, #tpu.memory_space<vmem>>, vector<1x1x32x8xbf16>
    %6 = vector.shape_cast %5 : vector<1x1x32x8xbf16> to vector<32x8xbf16>
    %c0_8 = arith.constant 0 : index
    %c0_9 = arith.constant 0 : index
    %c0_10 = arith.constant 0 : index
    %c0_11 = arith.constant 0 : index
    %7 = vector.load %arg6[%c0_8, %c0_9, %c0_10, %c0_11] : memref<1x1x32x8xbf16, #tpu.memory_space<vmem>>, vector<1x1x32x8xbf16>
    %8 = vector.shape_cast %7 : vector<1x1x32x8xbf16> to vector<32x8xbf16>
    %cst = arith.constant dense<0.000000e+00> : vector<16x32xf32>
    %9 = tpu.matmul %4, %6, %cst {dimension_numbers = #tpu.dot_dimension_numbers<[1], [1], [0], [0], [0, 0, 1, 0], [], []>} : vector<16x8xbf16>, vector<32x8xbf16>, vector<16x32xf32> -> vector<16x32xf32>
    %10 = tpu.iota {dimensions = array<i32: 1>} : vector<16x32xi32>
    %c12_i32 = arith.constant 12 : i32
    %11 = vector.broadcast %c12_i32 : i32 to vector<16x32xi32>
    %12 = arith.cmpi slt, %10, %11 : vector<16x32xi32>
    %cst_12 = arith.constant 0xFF800000 : f32
    %13 = vector.broadcast %cst_12 : f32 to vector<16x32xf32>
    %14 = arith.select %12, %9, %13 : vector<16x32xi1>, vector<16x32xf32>
    %c0_13 = arith.constant 0 : index
    %c0_14 = arith.constant 0 : index
    %15 = vector.load %arg8[%c0_13, %c0_14] : memref<16x1xf32, #tpu.memory_space<vmem>>, vector<16x1xf32>
    %cst_15 = arith.constant dense<0xFF800000> : vector<16xf32>
    %16 = vector.multi_reduction <maximumf>, %14, %cst_15 [1] : vector<16x32xf32> to vector<16xf32>
    %17 = vector.shape_cast %16 : vector<16xf32> to vector<16x1xf32>
    %18 = arith.maximumf %15, %17 : vector<16x1xf32>
    %19 = arith.subf %15, %18 : vector<16x1xf32>
    %20 = math.exp %19 : vector<16x1xf32>
    %21 = vector.broadcast %18 : vector<16x1xf32> to vector<16x32xf32>
    %22 = arith.subf %14, %21 : vector<16x32xf32>
    %23 = math.exp %22 : vector<16x32xf32>
    %c0_16 = arith.constant 0 : index
    %c0_17 = arith.constant 0 : index
    %24 = vector.load %arg9[%c0_16, %c0_17] : memref<16x1xf32, #tpu.memory_space<vmem>>, vector<16x1xf32>
    %25 = arith.mulf %20, %24 : vector<16x1xf32>
    %cst_18 = arith.constant dense<0.000000e+00> : vector<16xf32>
    %26 = vector.multi_reduction <add>, %23, %cst_18 [1] : vector<16x32xf32> to vector<16xf32>
    %27 = vector.shape_cast %26 : vector<16xf32> to vector<16x1xf32>
    %28 = arith.addf %25, %27 : vector<16x1xf32>
    %c0_19 = arith.constant 0 : index
    %c0_20 = arith.constant 0 : index
    %29 = vector.load %arg9[%c0_19, %c0_20] : memref<16x1xf32, #tpu.memory_space<vmem>>, vector<16x1xf32>
    tpu.vector_store %arg9[%c0_19, %c0_20], %28 {strides = array<i32>} : memref<16x1xf32, #tpu.memory_space<vmem>>, vector<16x1xf32>,
    %c0_21 = arith.constant 0 : index
    %c0_22 = arith.constant 0 : index
    %30 = vector.load %arg10[%c0_21, %c0_22] : memref<16x8xf32, #tpu.memory_space<vmem>>, vector<16x8xf32>
    %31 = vector.broadcast %20 : vector<16x1xf32> to vector<16x8xf32>
    %32 = arith.mulf %31, %30 : vector<16x8xf32>
    %33 = arith.truncf %23 : vector<16x32xf32> to vector<16x32xbf16>
    %cst_23 = arith.constant dense<0.000000e+00> : vector<16x8xf32>
    %34 = tpu.matmul %33, %8, %cst_23 {dimension_numbers = #tpu.dot_dimension_numbers<[1], [0], [0], [1], [0, 0, 1, 1], [], []>} : vector<16x32xbf16>, vector<32x8xbf16>, vector<16x8xf32> -> vector<16x8xf32>
    %35 = arith.addf %32, %34 : vector<16x8xf32>
    %c0_24 = arith.constant 0 : index
    %c0_25 = arith.constant 0 : index
    %36 = vector.load %arg10[%c0_24, %c0_25] : memref<16x8xf32, #tpu.memory_space<vmem>>, vector<16x8xf32>
    tpu.vector_store %arg10[%c0_24, %c0_25], %35 {strides = array<i32>} : memref<16x8xf32, #tpu.memory_space<vmem>>, vector<16x8xf32>,
    %c0_26 = arith.constant 0 : index
    %c0_27 = arith.constant 0 : index
    %37 = vector.load %arg8[%c0_26, %c0_27] : memref<16x1xf32, #tpu.memory_space<vmem>>, vector<16x1xf32>
    tpu.vector_store %arg8[%c0_26, %c0_27], %18 {strides = array<i32>} : memref<16x1xf32, #tpu.memory_space<vmem>>, vector<16x1xf32>,
    %c0_i32_28 = arith.constant 0 : i32
    %38 = arith.cmpi eq, %arg3, %c0_i32_28 : i32
    %39 = arith.extui %38 : i1 to i32
    %c0_i32_29 = arith.constant 0 : i32
    %40 = arith.cmpi ne, %39, %c0_i32_29 : i32
    scf.if %40 {
      %c0_30 = arith.constant 0 : index
      %c0_31 = arith.constant 0 : index
      %41 = vector.load %arg9[%c0_30, %c0_31] : memref<16x1xf32, #tpu.memory_space<vmem>>, vector<16x1xf32>
      %42 = tpu.reciprocal %41 {approx = true} : vector<16x1xf32> -> vector<16x1xf32>
      %43 = arith.mulf %41, %42 : vector<16x1xf32>
      %cst_32 = arith.constant 2.000000e+00 : f32
      %44 = vector.broadcast %cst_32 : f32 to vector<16x1xf32>
      %45 = arith.subf %44, %43 : vector<16x1xf32>
      %46 = arith.mulf %42, %45 : vector<16x1xf32>
      %c0_33 = arith.constant 0 : index
      %c0_34 = arith.constant 0 : index
      %47 = vector.load %arg10[%c0_33, %c0_34] : memref<16x8xf32, #tpu.memory_space<vmem>>, vector<16x8xf32>
      %48 = vector.broadcast %46 : vector<16x1xf32> to vector<16x8xf32>
      %49 = arith.mulf %47, %48 : vector<16x8xf32>
      %50 = arith.truncf %49 : vector<16x8xf32> to vector<16x8xbf16>
      %c0_35 = arith.constant 0 : index
      %c0_36 = arith.constant 0 : index
      %c0_37 = arith.constant 0 : index
      %c0_38 = arith.constant 0 : index
      %51 = vector.load %arg7[%c0_35, %c0_36, %c0_37, %c0_38] : memref<1x1x16x8xbf16, #tpu.memory_space<vmem>>, vector<1x1x16x8xbf16>
      %52 = vector.shape_cast %51 : vector<1x1x16x8xbf16> to vector<16x8xbf16>
      %53 = vector.shape_cast %50 : vector<16x8xbf16> to vector<1x1x16x8xbf16>
      tpu.vector_store %arg7[%c0_35, %c0_36, %c0_37, %c0_38], %53 {strides = array<i32>} : memref<1x1x16x8xbf16, #tpu.memory_space<vmem>>, vector<1x1x16x8xbf16>,
    } else {
    }
    return
  }
  func.func @transform_0(%arg0: i32, %arg1: i32, %arg2: i32, %arg3: i32) -> (i32, i32, i32, i32) {
    %c0_i32 = arith.constant 0 : i32
    %c0_i32_0 = arith.constant 0 : i32
    return %arg0, %arg1, %arg2, %c0_i32 : i32, i32, i32, i32
  }
  func.func @transform_1(%arg0: i32, %arg1: i32, %arg2: i32, %arg3: i32) -> (i32, i32, i32, i32) {
    %c0_i32 = arith.constant 0 : i32
    %c0_i32_0 = arith.constant 0 : i32
    return %arg0, %arg1, %arg3, %c0_i32 : i32, i32, i32, i32
  }
  func.func @transform_2(%arg0: i32, %arg1: i32, %arg2: i32, %arg3: i32) -> (i32, i32, i32, i32) {
    %c0_i32 = arith.constant 0 : i32
    %c0_i32_0 = arith.constant 0 : i32
    return %arg0, %arg1, %arg3, %c0_i32 : i32, i32, i32, i32
  }
  func.func @transform_3(%arg0: i32, %arg1: i32, %arg2: i32, %arg3: i32) -> (i32, i32, i32, i32) {
    %c0_i32 = arith.constant 0 : i32
    %c0_i32_0 = arith.constant 0 : i32
    return %arg0, %arg1, %arg2, %c0_i32 : i32, i32, i32, i32
  }
}

module attributes {stable_mosaic.version = 11 : i64} {
  func.func @_linear_kernel(%arg0: i32, %arg1: i32, %arg2: i32, %arg3: memref<16x32xbf16, #tpu.memory_space<vmem>>, %arg4: memref<32x32xbf16, #tpu.memory_space<vmem>>, %arg5: memref<1x32xf32, #tpu.memory_space<vmem>>, %arg6: memref<16x32xf32, #tpu.memory_space<vmem>>, %arg7: memref<16x32xf32, #tpu.memory_space<vmem>>) attributes {dimension_semantics = [#tpu.dimension_semantics<parallel>, #tpu.dimension_semantics<parallel>, #tpu.dimension_semantics<arbitrary>], iteration_bounds = array<i64: 1, 1, 1>, scalar_prefetch = 0 : i64, scratch_operands = 1 : i64, tpu.core_type = #tpu.core_type<tc>, window_params = [{transform_indices = @transform_0, window_bounds = array<i64: 16, 32>}, {transform_indices = @transform_1, window_bounds = array<i64: 32, 32>}, {transform_indices = @transform_2, window_bounds = array<i64: 1, 32>}, {transform_indices = @transform_3, window_bounds = array<i64: 16, 32>}]} {
    %c0_i32 = arith.constant 0 : i32
    %0 = arith.cmpi eq, %arg2, %c0_i32 : i32
    %1 = arith.extui %0 : i1 to i32
    %c0_i32_0 = arith.constant 0 : i32
    %2 = arith.cmpi ne, %1, %c0_i32_0 : i32
    scf.if %2 {
      %cst_10 = arith.constant 0.000000e+00 : f32
      %12 = vector.broadcast %cst_10 : f32 to vector<16x32xf32>
      %c0_11 = arith.constant 0 : index
      %c0_12 = arith.constant 0 : index
      %13 = vector.load %arg7[%c0_11, %c0_12] : memref<16x32xf32, #tpu.memory_space<vmem>>, vector<16x32xf32>
      tpu.vector_store %arg7[%c0_11, %c0_12], %12 {strides = array<i32>} : memref<16x32xf32, #tpu.memory_space<vmem>>, vector<16x32xf32>,
    } else {
    }
    %c0 = arith.constant 0 : index
    %c0_1 = arith.constant 0 : index
    %3 = vector.load %arg7[%c0, %c0_1] : memref<16x32xf32, #tpu.memory_space<vmem>>, vector<16x32xf32>
    %c0_2 = arith.constant 0 : index
    %c0_3 = arith.constant 0 : index
    %4 = vector.load %arg3[%c0_2, %c0_3] : memref<16x32xbf16, #tpu.memory_space<vmem>>, vector<16x32xbf16>
    %c0_4 = arith.constant 0 : index
    %c0_5 = arith.constant 0 : index
    %5 = vector.load %arg4[%c0_4, %c0_5] : memref<32x32xbf16, #tpu.memory_space<vmem>>, vector<32x32xbf16>
    %cst = arith.constant dense<0.000000e+00> : vector<16x32xf32>
    %6 = tpu.matmul %4, %5, %cst {dimension_numbers = #tpu.dot_dimension_numbers<[1], [0], [0], [1], [0, 0, 1, 1], [], []>} : vector<16x32xbf16>, vector<32x32xbf16>, vector<16x32xf32> -> vector<16x32xf32>
    %7 = arith.addf %3, %6 : vector<16x32xf32>
    %c0_6 = arith.constant 0 : index
    %c0_7 = arith.constant 0 : index
    %8 = vector.load %arg7[%c0_6, %c0_7] : memref<16x32xf32, #tpu.memory_space<vmem>>, vector<16x32xf32>
    tpu.vector_store %arg7[%c0_6, %c0_7], %7 {strides = array<i32>} : memref<16x32xf32, #tpu.memory_space<vmem>>, vector<16x32xf32>,
    %c0_i32_8 = arith.constant 0 : i32
    %9 = arith.cmpi eq, %arg2, %c0_i32_8 : i32
    %10 = arith.extui %9 : i1 to i32
    %c0_i32_9 = arith.constant 0 : i32
    %11 = arith.cmpi ne, %10, %c0_i32_9 : i32
    scf.if %11 {
      %c0_10 = arith.constant 0 : index
      %c0_11 = arith.constant 0 : index
      %12 = vector.load %arg7[%c0_10, %c0_11] : memref<16x32xf32, #tpu.memory_space<vmem>>, vector<16x32xf32>
      %c0_12 = arith.constant 0 : index
      %c0_13 = arith.constant 0 : index
      %13 = vector.load %arg5[%c0_12, %c0_13] : memref<1x32xf32, #tpu.memory_space<vmem>>, vector<1x32xf32>
      %14 = vector.broadcast %13 : vector<1x32xf32> to vector<16x32xf32>
      %15 = arith.addf %12, %14 : vector<16x32xf32>
      %c0_14 = arith.constant 0 : index
      %c0_15 = arith.constant 0 : index
      %16 = vector.load %arg6[%c0_14, %c0_15] : memref<16x32xf32, #tpu.memory_space<vmem>>, vector<16x32xf32>
      tpu.vector_store %arg6[%c0_14, %c0_15], %15 {strides = array<i32>} : memref<16x32xf32, #tpu.memory_space<vmem>>, vector<16x32xf32>,
    } else {
    }
    return
  }
  func.func @transform_0(%arg0: i32, %arg1: i32, %arg2: i32) -> (i32, i32) {
    %c0_i32 = arith.constant 0 : i32
    return %arg0, %arg2 : i32, i32
  }
  func.func @transform_1(%arg0: i32, %arg1: i32, %arg2: i32) -> (i32, i32) {
    %c0_i32 = arith.constant 0 : i32
    return %arg2, %arg1 : i32, i32
  }
  func.func @transform_2(%arg0: i32, %arg1: i32, %arg2: i32) -> (i32, i32) {
    %c0_i32 = arith.constant 0 : i32
    %c0_i32_0 = arith.constant 0 : i32
    return %c0_i32, %arg1 : i32, i32
  }
  func.func @transform_3(%arg0: i32, %arg1: i32, %arg2: i32) -> (i32, i32) {
    %c0_i32 = arith.constant 0 : i32
    return %arg0, %arg1 : i32, i32
  }
}

</mosaic_0001>

<bundles_post_ra>
// kernel: fwd.6
= control target key start
LH: loop header
LB: loop body
LE: loop exit
PB: predicated region body
PF: predicated region fallthrough
CT: control target
= control target key end

     0   :  { %vm19_vm0 = vcmask 130048   ;;  %v138_v0 = vmov 0.0   ;;  %vm139_vm1 = vmmov 0   ;;  %vm47_vm2 = vcmask 261120   ;;  %s184_s1 = inlined_call_operand.vmem [shape: bf16[32,16], index: 1, kind: input, shape index: {}]   ;;  %s185_s0 = inlined_call_operand.vmem [shape: bf16[16,32], index: 0, kind: input, shape index: {}]   ;;  %s186_s2 = inlined_call_operand.vmem [shape: f32[1,16], index: 2, kind: input, shape index: {}]   ;;  %s187_s3 = inlined_call_operand.vmem [shape: f32[16,16], index: 3, kind: output, shape index: {}]  }
   0x1   :  { %125 = vmatprep.subr.bf16.mxu0 %v138_v0  ;;  %v135_v1 = vld [vmem:[%s184_s1] sm:$0xff]   ;;  %129 = vmatprep.mubr.msk.bf16.mxu0 %vm139_vm1, %v138_v0  ;;  %20 = vst.msk [vmem:[#allocation2] sm:$0xff] %vm19_vm0, %v138_v0  ;;  %21 = vst.msk [vmem:[#allocation2 + $0x8] sm:$0xff] %vm19_vm0, %v138_v0  ;;  %v136_v2 = vld [vmem:[%s184_s1 + $0x8] sm:$0xff]  }
   0x2   :  { %126 = vmatpush3.bf16.msra.mxu0 %v135_v1  ;;  %v137_v3 = vld [vmem:[%s185_s0] sm:$0xff]  }
   0x3   :  { %127 = vmatprep.subr.bf16.mxu0 %v138_v0  ;;  %v121_v12 = vld [vmem:[%s186_s2] ss:$0 sm:$0xff] }
   0x6   :  { %128 = vmatpush3.bf16.msra.mxu0 %v136_v2 }
   0x8   :  { %v22_v4 = vld [vmem:[#allocation2] sm:$0xff]  ;;  %v23_v6 = vld [vmem:[#allocation2 + $0x8] sm:$0xff] }
   0x9   :  { %130 = vmatmul.mubr.msk.bf16.vlgmr.msra.gmra.mrb[0].mxu0 %vm47_vm2, %v137_v3 }
  0xdc   :  { %v85_v5 = vpop.f32.mrb[0].mxu0 }
  0xdd   :  { %v92_v7 = vadd.f32 %v85_v5, %v22_v4  ;;  %v131_v8 = vpop.f32.mrb[1].mxu0 }
  0xde   :  { %v88_v9 = vpop.f32.mrb[2].mxu0 }
  0xdf   :  { %95 = vst.msk [vmem:[#allocation2] sm:$0xff] %vm19_vm0, %v92_v7  ;;  %v93_v10 = vadd.f32 %v88_v9, %v23_v6  ;;  %v132_v11 = vpop.f32.mrb[3].mxu0 }
  0xe1   :  { %96 = vst.msk [vmem:[#allocation2 + $0x8] sm:$0xff] %vm19_vm0, %v93_v10 }
  0xe6   :  { %v100_v13 = vld [vmem:[#allocation2] sm:$0xff] }
  0xe7   :  { %v109_v14 = vadd.f32 %v121_v12, %v100_v13 }
  0xe8   :  { %v101_v15 = vld [vmem:[#allocation2 + $0x8] sm:$0xff] }
  0xe9   :  { %111 = vst.msk [vmem:[%s187_s3] sm:$0xff] %vm19_vm0, %v109_v14  ;;  %v110_v16 = vadd.f32 %v121_v12, %v101_v15 }
  0xeb   :  { %112 = vst.msk [vmem:[%s187_s3 + $0x8] sm:$0xff] %vm19_vm0, %v110_v16 }

// kernel: fwd.5
= control target key start
LH: loop header
LB: loop body
LE: loop exit
PB: predicated region body
PF: predicated region fallthrough
CT: control target
= control target key end

     0   :  { %vm19_vm0 = vcmask 261120   ;;  %v137_v0 = vmov 0.0   ;;  %vm138_vm1 = vmmov 0   ;;  %s184_s1 = inlined_call_operand.vmem [shape: bf16[32,32], index: 1, kind: input, shape index: {}]   ;;  %s185_s0 = inlined_call_operand.vmem [shape: bf16[16,32], index: 0, kind: input, shape index: {}]   ;;  %s186_s2 = inlined_call_operand.vmem [shape: f32[1,32], index: 2, kind: input, shape index: {}]   ;;  %s187_s3 = inlined_call_operand.vmem [shape: f32[16,32], index: 3, kind: output, shape index: {}]  }
   0x1   :  { %124 = vmatprep.subr.bf16.mxu0 %v137_v0  ;;  %v134_v1 = vld [vmem:[%s184_s1] sm:$0xff]   ;;  %128 = vmatprep.mubr.msk.bf16.mxu0 %vm138_vm1, %v137_v0  ;;  %20 = vst.msk [vmem:[#allocation2] sm:$0xff] %vm19_vm0, %v137_v0  ;;  %21 = vst.msk [vmem:[#allocation2 + $0x8] sm:$0xff] %vm19_vm0, %v137_v0  ;;  %v135_v2 = vld [vmem:[%s184_s1 + $0x8] sm:$0xff]  }
   0x2   :  { %125 = vmatpush3.bf16.msra.mxu0 %v134_v1  ;;  %v136_v3 = vld [vmem:[%s185_s0] sm:$0xff]  }
   0x3   :  { %126 = vmatprep.subr.bf16.mxu0 %v137_v0  ;;  %v120_v12 = vld [vmem:[%s186_s2] ss:$0 sm:$0xff] }
   0x6   :  { %127 = vmatpush3.bf16.msra.mxu0 %v135_v2 }
   0x8   :  { %v22_v4 = vld [vmem:[#allocation2] sm:$0xff]  ;;  %v23_v6 = vld [vmem:[#allocation2 + $0x8] sm:$0xff] }
   0x9   :  { %129 = vmatmul.mubr.msk.bf16.vlgmr.msra.gmra.mrb[0].mxu0 %vm19_vm0, %v136_v3 }
  0xdc   :  { %v85_v5 = vpop.f32.mrb[0].mxu0 }
  0xdd   :  { %v92_v7 = vadd.f32 %v85_v5, %v22_v4  ;;  %v130_v8 = vpop.f32.mrb[1].mxu0 }
  0xde   :  { %v88_v9 = vpop.f32.mrb[2].mxu0 }
  0xdf   :  { %94 = vst.msk [vmem:[#allocation2] sm:$0xff] %vm19_vm0, %v92_v7  ;;  %v93_v10 = vadd.f32 %v88_v9, %v23_v6  ;;  %v131_v11 = vpop.f32.mrb[3].mxu0 }
  0xe1   :  { %95 = vst.msk [vmem:[#allocation2 + $0x8] sm:$0xff] %vm19_vm0, %v93_v10 }
  0xe6   :  { %v99_v13 = vld [vmem:[#allocation2] sm:$0xff] }
  0xe7   :  { %v108_v14 = vadd.f32 %v120_v12, %v99_v13 }
  0xe8   :  { %v100_v15 = vld [vmem:[#allocation2 + $0x8] sm:$0xff] }
  0xe9   :  { %110 = vst.msk [vmem:[%s187_s3] sm:$0xff] %vm19_vm0, %v108_v14  ;;  %v109_v16 = vadd.f32 %v120_v12, %v100_v15 }
  0xeb   :  { %111 = vst.msk [vmem:[%s187_s3 + $0x8] sm:$0xff] %vm19_vm0, %v109_v16 }

// kernel: fwd.8
= control target key start
LH: loop header
LB: loop body
LE: loop exit
PB: predicated region body
PF: predicated region fallthrough
CT: control target
= control target key end

     0   :  { %s950_s12 = smov 0   ;;  %s952_s13 = smov 0   ;;  %s1057_s0 = inlined_call_operand.vmem [shape: bf16[2,2,16,8], index: 0, kind: input, shape index: {}]   ;;  %s1058_s1 = inlined_call_operand.vmem [shape: bf16[4,2,32,8], index: 1, kind: input, shape index: {}]   ;;  %s1059_s2 = inlined_call_operand.vmem [shape: bf16[4,2,32,8], index: 2, kind: input, shape index: {}]   ;;  %s1060_s3 = inlined_call_operand.vmem [shape: bf16[2,2,16,8], index: 3, kind: output, shape index: {}]  }
   0x1   :  { %s954_s14 = smov 0   ;;  %s956_s15 = smov 0  }
   0x2   :  { %s958_s16 = smov 0  }
   0x3 LB: > { %s35_s17 = sadd.s32 1, %s916_s14  ;;  %s39_s18 = sadd.s32 1, %s920_s15  ;;  %s924_s16 = sphi %s958_s16, %s13_s16   ;;  %s920_s15 = sphi %s956_s15, %s1064_s15   ;;  %s916_s14 = sphi %s954_s14, %s1063_s14   ;;  %s912_s13 = sphi %s952_s13, %s1062_s13   ;;  %s908_s12 = sphi %s950_s12, %s1061_s12  }
   0x4   : > { %p37_p0 = scmp.ge.s32.totalorder %s35_s17, 2  ;;  %p775_p1 = scmp.ge.s32.totalorder %s924_s16, 1 }
   0x5   : > { %p226_p2 = scmp.lt.s32.totalorder %s924_s16, 5 }
   0x6   : > { %s1066_s17 = smov (%p37_p0, %s35_s17), 0  ;;  %s1068_s18 = smov (!%p37_p0, %s39_s18), %s920_s15 }
   0x7   : > { %p227_p3 = pnand %p775_p1, %p226_p2  ;;  %p41_p4 = scmp.ge.s32.totalorder %s1068_s18, 2 }
   0x8   : > { %p295_p5 = scmp.lt.s32.totalorder (!%p227_p3), %s908_s12, 1  ;;  %p307_p6 = scmp.lt.s32.totalorder (!%p227_p3), %s912_s13, 3  ;;  %vm358_vm0 = vcmask (!%p227_p3), 64512   ;;  %v926_v0 = vmov (!%p227_p3), 0.0   ;;  %vm927_vm1 = vmmov (!%p227_p3), 0   ;;  %vm353_vm2 = vcmask (!%p227_p3), 7168  }
   0x9   : > { %s1070_s18 = smov (%p41_p4, %s1068_s18), 0  ;;  %230 = sbr.rel (%p227_p3) target bundleno = 848 (0x350), region = 32 }
   0xa   : > { %807 = vmatprep.subr.bf16.mxu0 (!%p227_p3), %v926_v0  ;;  %359 = vst.msk [vmem:[#allocation4] sm:$0xff] (!%p227_p3), %vm358_vm0, %v926_v0  ;;  %360 = vst.msk [vmem:[#allocation4 + $0x8] sm:$0xff] (!%p227_p3), %vm358_vm0, %v926_v0  ;;  %811 = vmatprep.mubr.msk.bf16.mxu0 (!%p227_p3), %vm927_vm1, %v926_v0  ;;  %p293_p7 = scmp.lt.s32.totalorder (!%p227_p3), %s912_s13, 1  ;;  %v928_v6 = vmov (!%p227_p3), -inf   ;;  %v437_v7 = vlaneseq (!%p227_p3)  ;;  %vm444_vm4 = vcmask (!%p227_p3), 261120   ;;  %v929_v17 = vmov (!%p227_p3), 0  }
   0xb   : > { %815 = vmatprep.subr.bf16.mxu1 (!%p227_p3), %v926_v0  ;;  %819 = vmatprep.mubr.msk.bf16.mxu1 (!%p227_p3), %vm927_vm1, %v926_v0  ;;  %354 = vst.msk [vmem:[#allocation2] sm:$0xff] (!%p227_p3), %vm353_vm2, %v928_v6  ;;  %355 = vst.msk [vmem:[#allocation2 + $0x8] sm:$0xff] (!%p227_p3), %vm353_vm2, %v928_v6  ;;  %vm602_vm5 = vcmask (!%p227_p3), 60416  }
   0xc   : > { %356 = vst.msk [vmem:[#allocation3] sm:$0xff] (!%p227_p3), %vm353_vm2, %v926_v0  ;;  %357 = vst.msk [vmem:[#allocation3 + $0x8] sm:$0xff] (!%p227_p3), %vm353_vm2, %v926_v0  ;;  %v438_v8 = vand.u32 (!%p227_p3), 127, %v437_v7  ;;  %867 = vset.pattern.permute.xlu1 (!%p227_p3), %v929_v17  ;;  %868 = vset.pattern.permute.xlu0 (!%p227_p3), %v929_v17 }
   0xe   : > { %vm439_vm3 = vcmp.lt.s32.totalorder (!%p227_p3), %v438_v8, 12 }
  0x10   : > { %s1072_s12 = smov (!%p295_p5, %s908_s12), 1 }
  0x11   : > { %s308_s19 = scalar_select %p307_p6, %s912_s13, 3  ;;  %v490_v61 = vld [vmem:[#allocation4] sm:$0xff]  ;;  %v491_v63 = vld [vmem:[#allocation4 + $0x8] sm:$0xff] }
  0x12   : > { %s779_s20 = sshll.u32 %s1072_s12, 2  ;;  %s776_s27 = sshll.u32 %s1072_s12, 1  ;;  %v442_v18 = vld [vmem:[#allocation2] sm:$0xff]  ;;  %v443_v21 = vld [vmem:[#allocation2 + $0x8] sm:$0xff] }
  0x13   : > { %s780_s21 = sshll.u32 %s308_s19, 3  ;;  %s1074_s13 = smov (!%p293_p7, %s912_s13), 1  ;;  %v475_v43 = vld [vmem:[#allocation3] sm:$0xff]  ;;  %v476_v46 = vld [vmem:[#allocation3 + $0x8] sm:$0xff] }
  0x14   : > { %s993_s22 = sadd.s32 %s780_s21, %s779_s20  ;;  %s777_s28 = sshll.u32 %s1074_s13, 2 }
  0x15   : > { %s781_s23 = sshll.u32 %s993_s22, 2  ;;  %s1003_s29 = sadd.s32 %s777_s28, %s776_s27 }
  0x16   : > { %s318_s26 = scalar_lea.vmem %s1058_s1, %s781_s23  ;;  %s778_s30 = sshll.u32 %s1003_s29, 2 }
  0x17   : > { %v869_v1 = vld [vmem:[%s318_s26] sm:$0xff]   ;;  %v870_v3 = vld [vmem:[%s318_s26 + $0x8] sm:$0xff]   ;;  %s304_s6 = scalar_lea.vmem %s1057_s0, %s778_s30  ;;  %s332_s9 = scalar_lea.vmem %s1059_s2, %s781_s23 }
  0x18   : > { %v391_v2 = vsel %vm358_vm0, %v869_v1, 0  ;;  %v394_v4 = vsel %vm358_vm0, %v870_v3, 0  ;;  %v871_v5 = vld [vmem:[%s304_s6] sm:$0xff]   ;;  %v873_v27 = vld [vmem:[%s332_s9 + $0x8] sm:$0xff]   ;;  %s346_s12 = scalar_lea.vmem %s1060_s3, %s778_s30 }
  0x19   : > { %808 = vmatpush3.bf16.xpose.msra.mxu0 %v391_v2  ;;  %v872_v26 = vld [vmem:[%s332_s9] sm:$0xff]  }
  0x1a   : > { %809 = vmatprep.subr.bf16.mxu0 %v926_v0  ;;  %816 = vmatpush3.bf16.msra.mxu1 %v872_v26 }
  0x1b   : > { %817 = vmatprep.subr.bf16.mxu1 %v926_v0 }
  0x1e   : > { %818 = vmatpush3.bf16.msra.mxu1 %v873_v27 }
  0x21   : > { %810 = vmatpush3.bf16.xpose.msra.mxu0 %v394_v4 }
  0x28   : > { %812 = vmatmul.mubr.msk.bf16.vlgmr.msra.gmra.mrb[0].mxu0 %vm358_vm0, %v871_v5 }
  0xfb   : > { %v430_v9 = vpop.f32.mrb[0].mxu0 }
  0xfc   : > { %v440_v10 = vsel %vm439_vm3, %v430_v9, -inf  ;;  %v813_v11 = vpop.f32.mrb[1].mxu0 }
  0xfd   : > { %v433_v12 = vpop.f32.mrb[2].mxu0  ;;  %v445_v13 = vsel %vm444_vm4, %v440_v10, -inf }
  0xfe   : > { %v441_v14 = vsel %vm439_vm3, %v433_v12, -inf  ;;  %446 = vmax.xlane.f32.xlu0 %v445_v13  ;;  %v814_v15 = vpop.f32.mrb[3].mxu0 }
  0xff   : > { %v448_v16 = vsel %vm444_vm4, %v441_v14, -inf }
 0x102   : > { %449 = vmax.xlane.f32.xlu0 %v448_v16 }
 0x18b   : > { %v447_v19 = vpop.xlane.xlu0 %446 }
 0x18c   : > { %v451_v20 = vmax.f32 %v442_v18, %v447_v19 }
 0x18e   : > { %v453_v22 = vsub.f32 %v442_v18, %v451_v20  ;;  %565 = vst.msk [vmem:[#allocation2] sm:$0xff] %vm353_vm2, %v451_v20  ;;  %461 = vperm.xlu1 %867, %v451_v20  }
 0x18f   : > { %v450_v23 = vpop.xlane.xlu0 %449 }
 0x190   : > { %v452_v24 = vmax.f32 %v443_v21, %v450_v23  ;;  %v455_v40 = vmul.f32 1.442695, %v453_v22 }
 0x192   : > { %v454_v25 = vsub.f32 %v443_v21, %v452_v24  ;;  %566 = vst.msk [vmem:[#allocation2 + $0x8] sm:$0xff] %vm353_vm2, %v452_v24  ;;  %466 = vperm.xlu1 %867, %v452_v24  }
 0x194   : > { %v457_v39 = vmul.f32 1.442695, %v454_v25 }
 0x20d   : > { %v462_v28 = vpop.permute.xlu1 %461 }
 0x20e   : > { %v469_v29 = vsub.f32 %v440_v10, %v462_v28 }
 0x210   : > { %v471_v30 = vmul.f32 1.442695, %v469_v29 }
 0x211   : > { %v467_v31 = vpop.permute.xlu1 %466 }
 0x212   : > { %874 = vpow2.f32 %v471_v30  ;;  %v470_v32 = vsub.f32 %v441_v14, %v467_v31 }
 0x214   : > { %v473_v33 = vmul.f32 1.442695, %v470_v32 }
 0x216   : > { %876 = vpow2.f32 %v473_v33 }
 0x217   : > { %878 = vpow2.f32 %v457_v39 }
 0x218   : > { %880 = vpow2.f32 %v455_v40 }
 0x21c   : > { %v875_v34 = vpop.eup %874 }
 0x21d   : > { %v479_v35 = vsel %vm444_vm4, %v875_v34, 0.0 }
 0x21e   : > { %480 = vadd.xlane.f32.xlu0 %v479_v35 }
 0x220   : > { %v877_v36 = vpop.eup %876 }
 0x221   : > { %v482_v37 = vsel %vm444_vm4, %v877_v36, 0.0  ;;  %v504_v38 = vpack.c.bf16 %v877_v36, %v875_v34  ;;  %v879_v41 = vpop.eup %878 }
 0x222   : > { %483 = vadd.xlane.f32.xlu1 %v482_v37  ;;  %v881_v42 = vpop.eup %880  ;;  %v478_v48 = vmul.f32 %v879_v41, %v476_v46 }
 0x223   : > { %820 = vmatmul.mubr.msk.bf16.vlgmr.msra.gmra.mrb[0].mxu1 %vm444_vm4, %v504_v38  ;;  %v477_v44 = vmul.f32 %v881_v42, %v475_v43 }
 0x233   : > { %499 = vperm.xlu1 %867, %v879_v41  }
 0x234   : > { %494 = vperm.xlu0 %868, %v881_v42  }
 0x2ab   : > { %v481_v45 = vpop.xlane.xlu0 %480 }
 0x2ac   : > { %v485_v47 = vadd.f32 %v481_v45, %v477_v44 }
 0x2ae   : > { %488 = vst.msk [vmem:[#allocation3] sm:$0xff] %vm353_vm2, %v485_v47 }
 0x2af   : > { %v484_v49 = vpop.xlane.xlu1 %483 }
 0x2b0   : > { %v486_v50 = vadd.f32 %v484_v49, %v478_v48 }
 0x2b2   : > { %489 = vst.msk [vmem:[#allocation3 + $0x8] sm:$0xff] %vm353_vm2, %v486_v50 }
 0x2b3   : > { %v495_v62 = vpop.permute.xlu0 %494  ;;  %v500_v0 = vpop.permute.xlu1 %499 }
 0x2b4   : > { %v502_v1 = vmul.f32 %v495_v62, %v490_v61  ;;  %v503_v3 = vmul.f32 %v500_v0, %v491_v63 }
 0x2b5   : > { %v570_v51 = vld [vmem:[#allocation3] sm:$0xff] }
 0x2b6   : > { %882 = vrcp.f32 %v570_v51 }
 0x2b9   : > { %v571_v52 = vld [vmem:[#allocation3 + $0x8] sm:$0xff] }
 0x2ba   : > { %884 = vrcp.f32 %v571_v52 }
 0x2c0   : > { %v883_v53 = vpop.eup %882 }
 0x2c1   : > { %v574_v54 = vmul.f32 %v883_v53, %v570_v51 }
 0x2c3   : > { %v576_v55 = vsub.f32 2.0, %v574_v54 }
 0x2c4   : > { %v885_v56 = vpop.eup %884 }
 0x2c5   : > { %v578_v57 = vmul.f32 %v883_v53, %v576_v55  ;;  %v575_v58 = vmul.f32 %v885_v56, %v571_v52 }
 0x2c7   : > { %584 = vperm.xlu0 %868, %v578_v57   ;;  %v577_v59 = vsub.f32 2.0, %v575_v58 }
 0x2c9   : > { %v579_v60 = vmul.f32 %v885_v56, %v577_v59 }
 0x2cb   : > { %589 = vperm.xlu0 %868, %v579_v60  }
 0x2f6   : > { %v554_v2 = vpop.f32.mrb[0].mxu1 }
 0x2f7   : > { %v561_v4 = vadd.f32 %v554_v2, %v502_v1  ;;  %v821_v5 = vpop.f32.mrb[1].mxu1 }
 0x2f8   : > { %v557_v6 = vpop.f32.mrb[2].mxu1 }
 0x2f9   : > { %563 = vst.msk [vmem:[#allocation4] sm:$0xff] %vm358_vm0, %v561_v4  ;;  %v562_v7 = vadd.f32 %v557_v6, %v503_v3  ;;  %v822_v8 = vpop.f32.mrb[3].mxu1 }
 0x2fb   : > { %564 = vst.msk [vmem:[#allocation4 + $0x8] sm:$0xff] %vm358_vm0, %v562_v7 }
 0x300   : > { %v580_v9 = vld [vmem:[#allocation4] sm:$0xff] }
 0x302   : > { %v581_v13 = vld [vmem:[#allocation4 + $0x8] sm:$0xff] }
 0x346   : > { %v585_v10 = vpop.permute.xlu0 %584 }
 0x347   : > { %v592_v11 = vmul.f32 %v585_v10, %v580_v9 }
 0x349   : > { %v799_v12 = vpack.c.bf16 %v592_v11, %v592_v11 }
 0x34a   : > { %v590_v14 = vpop.permute.xlu0 %589 }
 0x34b   : > { %603 = vst.msk [vmem:[%s346_s12] sm:$0xf] %vm602_vm5, %v799_v12  ;;  %v593_v15 = vmul.f32 %v590_v14, %v581_v13 }
 0x34d   : > { %v800_v16 = vpack.c.bf16 %v593_v15, %v593_v15 }
 0x34f   : > { %604 = vst.msk [vmem:[%s346_s12 + $0x4] sm:$0xf] %vm602_vm5, %v800_v16 }
 0x350 PF: > { %s13_s16 = sadd.s32 1, %s924_s16   ;;  %s1061_s12 = smov %s916_s14 }
 0x351   : > { %p10_p8 = scmp.ge.s32.totalorder %s13_s16, 6   ;;  %s1062_s13 = smov %s920_s15 }
 0x352   : > { %s1063_s14 = smov %s1066_s17  ;;  %s1064_s15 = smov %s1070_s18 }
 0x353   :  { %12 = sbr.rel (!%p10_p8) target bundleno = 3 (0x3), region = 76 }

// kernel: fwd.9
= control target key start
LH: loop header
LB: loop body
LE: loop exit
PB: predicated region body
PF: predicated region fallthrough
CT: control target
= control target key end

     0   :  { %v177_v1 = vmov 0.0   ;;  %vm178_vm0 = vmmov 0   ;;  %vm20_vm1 = vcmask 261120   ;;  %s233_s0 = inlined_call_operand.vmem [shape: bf16[16,32], index: 0, kind: input, shape index: {}]   ;;  %s234_s1 = inlined_call_operand.vmem [shape: bf16[32,32], index: 1, kind: input, shape index: {}]   ;;  %s235_s2 = inlined_call_operand.vmem [shape: f32[1,32], index: 2, kind: input, shape index: {}]   ;;  %s236_s3 = inlined_call_operand.hbm [shape: f32[16,32], index: 3, kind: output, shape index: {}]  }
   0x1   :  { %v150_v0 = vld [vmem:[%s234_s1] sm:$0xff]   ;;  %137 = vmatprep.subr.bf16.mxu0 %v177_v1  ;;  %v151_v2 = vld [vmem:[%s234_s1 + $0x8] sm:$0xff]   ;;  %141 = vmatprep.mubr.msk.bf16.mxu0 %vm178_vm0, %v177_v1  ;;  %21 = vst.msk [vmem:[#allocation2] sm:$0xff] %vm20_vm1, %v177_v1  ;;  %22 = vst.msk [vmem:[#allocation2 + $0x8] sm:$0xff] %vm20_vm1, %v177_v1 }
   0x2   :  { %138 = vmatpush3.bf16.msra.mxu0 %v150_v0 }
   0x3   :  { %139 = vmatprep.subr.bf16.mxu0 %v177_v1 }
   0x4   :  { %8 = vsyncpa [#allocation4], 0  ;;  %v152_v3 = vld [vmem:[%s233_s0] sm:$0xff]   ;;  %s179_s0 = smov [#allocation3]  }
   0x5   :  { %v133_v12 = vld [vmem:[%s235_s2] ss:$0 sm:$0xff]  ;;  %s118_s19 = sshll.u32 %s179_s0, 4  ;;  %s119_s19 = int_to_ptr.vmem [resolvable:$true] %s118_s19 }
   0x6   :  { %140 = vmatpush3.bf16.msra.mxu0 %v151_v2  ;;  %s153_s20 = scalar_lea.vmem %s119_s19, 256  ;;  %p158_p1 = scmp.lt.s32.totalorder %s119_s19, %s119_s19 }
   0x7   :  { %p154_p0 = scmp.ne.s32.totalorder %s119_s19, %s153_s20  ;;  %p159_p2 = scmp.lt.s32.totalorder %s153_s20, %s153_s20 }
   0x8   :  { %v23_v4 = vld [vmem:[#allocation2] sm:$0xff]  ;;  %v24_v6 = vld [vmem:[#allocation2 + $0x8] sm:$0xff] }
   0x9   :  { %142 = vmatmul.mubr.msk.bf16.vlgmr.msra.gmra.mrb[0].mxu0 %vm20_vm1, %v152_v3  ;;  %p160_p3 = por %p159_p2, %p158_p1 }
   0xb   :  { %p161_p4 = pnand %p160_p3, %p154_p0 }
  0xdc   :  { %v86_v5 = vpop.f32.mrb[0].mxu0 }
  0xdd   :  { %v93_v7 = vadd.f32 %v86_v5, %v23_v4  ;;  %v143_v8 = vpop.f32.mrb[1].mxu0 }
  0xde   :  { %v89_v9 = vpop.f32.mrb[2].mxu0 }
  0xdf   :  { %95 = vst.msk [vmem:[#allocation2] sm:$0xff] %vm20_vm1, %v93_v7  ;;  %v94_v10 = vadd.f32 %v89_v9, %v24_v6  ;;  %v144_v11 = vpop.f32.mrb[3].mxu0 }
  0xe1   :  { %96 = vst.msk [vmem:[#allocation2 + $0x8] sm:$0xff] %vm20_vm1, %v94_v10 }
  0xe6   :  { %v100_v13 = vld [vmem:[#allocation2] sm:$0xff] }
  0xe7   :  { %v109_v14 = vadd.f32 %v133_v12, %v100_v13 }
  0xe8   :  { %v101_v15 = vld [vmem:[#allocation2 + $0x8] sm:$0xff] }
  0xe9   :  { %v110_v16 = vadd.f32 %v133_v12, %v101_v15  ;;  %111 = vst.msk [vmem:[#allocation3] sm:$0xff] %vm20_vm1, %v109_v14 }
  0xeb   :  { %112 = vst.msk [vmem:[#allocation3 + $0x8] sm:$0xff] %vm20_vm1, %v110_v16 }
  0xec   :  { %164 = shalt.err (!%p161_p4)
}
  0xed   :  { %s165_s22 = scalar_lea.hbm %s236_s3, 256 }
  0xee   :  { %p166_p5 = scmp.ne.s32.totalorder %s236_s3, %s165_s22  ;;  %p169_p6 = scmp.lt.u32.totalorder %s165_s22, %s236_s3 }
  0xf0   :  { %p171_p7 = pnand %p169_p6, %p166_p5 }
  0xf2   :  { %174 = shalt.err (!%p171_p7)
}
  0xf3   :  { %s180_s27 = smov 128   ;;  %s181_s28 = smov 8  }
  0xf4   :  { %124 = dma.vmem_to_hbm [thread:$0]  %s119_s19, 256, %s236_s3, [#allocation4], %s180_s27, %s180_s27, %s181_s28  }
  0xf5   :  { %175 = dma.done.wait [#allocation4], 256  }
  0xf6   :  { %176 = vsyncadd [#allocation4], 4294967040 }
  0xf7   :  { %128 = vsyncpa [#allocation4], 1 }

</bundles_post_ra>
